<compile_context>
chip_gen: v7x
topology: tpu7x:2x2x1
jax: 0.10.0
libtpu: 0.0.40
codegen_flags: <defaults>
</compile_context>

<pallas_src>
import functools
import math

import jax
import jax.numpy as jnp
from jax.experimental import pallas as pl
from jax.experimental.pallas import tpu as pltpu


_LANES = 512        # lane-dense last dim (large multiple of 128 -> unmasked vst)
_BLOCK_ROWS = 256   # (256, 512) f32 tile = 512 KiB; double-buffered << 64 MiB (v7x)
_ROW_ALIGN = 32     # covers f32/bf16/int8 sublane packing


def _focal_loss_tile(x, z, *, gamma, alpha):
    """Elementwise focal-modulated BCE-with-logits on one tile (f32 math)."""
    x = x.astype(jnp.float32)
    z = z.astype(jnp.float32)

    # Shared exp(-|x|): drives both the stable BCE log term and the sigmoid.
    e = jnp.exp(-jnp.abs(x))
    # BCEWithLogitsLoss(reduction='none'), numerically stable:
    #   loss = max(x, 0) - x*z + log1p(exp(-|x|))
    bce = jnp.maximum(x, 0.0) - x * z + jnp.log1p(e)

    inv = 1.0 / (1.0 + e)
    p = jnp.where(x >= 0.0, inv, e * inv)          # == sigmoid(x)

    p_t = z * p + (1.0 - z) * (1.0 - p)
    alpha_factor = z * alpha + (1.0 - z) * (1.0 - alpha)
    omp = 1.0 - p_t                                # in [0, 1]

    # (1 - p_t) ** gamma, specialized for cheap common exponents.
    if gamma == 0.0:
        mf = jnp.ones_like(omp)
    elif gamma == 1.0:
        mf = omp
    elif gamma == 1.5:
        mf = omp * jnp.sqrt(omp)                   # 1 sqrt + 1 mul, 0**1.5 == 0
    elif gamma == 2.0:
        mf = omp * omp
    else:
        mf = jnp.where(
            omp > 0.0,
            jnp.exp(gamma * jnp.log(jnp.maximum(omp, 1e-38))),
            0.0,
        )
    return bce * alpha_factor * mf


def _focal_sum_kernel(pred_ref, true_ref, psum_ref, *, gamma, alpha):
    loss = _focal_loss_tile(pred_ref[...], true_ref[...], gamma=gamma, alpha=alpha)
    psum_ref[0, 0] = jnp.sum(loss)


def _focal_elem_kernel(pred_ref, true_ref, loss_ref, *, gamma, alpha):
    loss_ref[...] = _focal_loss_tile(
        pred_ref[...], true_ref[...], gamma=gamma, alpha=alpha
    )


def _pad_and_tile(pred, true):
    """Flatten, pad with zero-loss elements, reshape to a lane-dense slab."""
    n = math.prod(pred.shape)
    rows_raw = pl.cdiv(n, _LANES)
    block_rows = min(_BLOCK_ROWS, _ROW_ALIGN * pl.cdiv(rows_raw, _ROW_ALIGN))
    rows = block_rows * pl.cdiv(rows_raw, block_rows)
    n_pad = rows * _LANES

    pred_flat = pred.reshape(-1)
    true_flat = true.reshape(-1)
    if n_pad > n:
        # pred=+100, true=1  =>  bce ~ 0 (underflow) and modulating_factor == 0,
        # so padded elements contribute exactly 0 to any sum.
        pad = n_pad - n
        pred_flat = jnp.concatenate(
            [pred_flat, jnp.full((pad,), 100.0, dtype=pred_flat.dtype)]
        )
        true_flat = jnp.concatenate(
            [true_flat, jnp.ones((pad,), dtype=true_flat.dtype)]
        )
    return (
        pred_flat.reshape(rows, _LANES),
        true_flat.reshape(rows, _LANES),
        n,
        rows,
        block_rows,
    )


def focal_loss(pred, true, gamma=1.5, alpha=0.25, reduction="mean"):
    """Focal loss over BCE-with-logits. pred/true: same-shape float arrays."""
    pred2d, true2d, n, rows, block_rows = _pad_and_tile(pred, true)
    grid = rows // block_rows
    n_pad = rows * _LANES

    in_specs = [
        pl.BlockSpec((block_rows, _LANES), lambda i: (i, 0)),
        pl.BlockSpec((block_rows, _LANES), lambda i: (i, 0)),
    ]
    compiler_params = pltpu.CompilerParams(
        dimension_semantics=("parallel",),
        vmem_limit_bytes=32 * 1024 * 1024,
    )
    in_bytes = (pred2d.dtype.itemsize + true2d.dtype.itemsize) * n_pad

    if reduction in ("mean", "sum"):
        kernel = functools.partial(
            _focal_sum_kernel, gamma=float(gamma), alpha=float(alpha)
        )
        partial_sums = pl.pallas_call(
            kernel,
            grid=(grid,),
            out_shape=jax.ShapeDtypeStruct((grid, 1), jnp.float32),
            in_specs=in_specs,
            out_specs=pl.BlockSpec(
                (1, 1), lambda i: (i, 0), memory_space=pltpu.SMEM
            ),
            compiler_params=compiler_params,
            cost_estimate=pl.CostEstimate(
                flops=20 * n_pad,
                transcendentals=3 * n_pad,
                bytes_accessed=in_bytes + 4 * grid,
            ),
        )(pred2d, true2d)
        total = jnp.sum(partial_sums)
        if reduction == "mean":
            return total / jnp.float32(n)
        return total

    # reduction == 'none': materialize the elementwise loss.
    kernel = functools.partial(
        _focal_elem_kernel, gamma=float(gamma), alpha=float(alpha)
    )
    loss2d = pl.pallas_call(
        kernel,
        grid=(grid,),
        out_shape=jax.ShapeDtypeStruct((rows, _LANES), jnp.float32),
        in_specs=in_specs,
        out_specs=pl.BlockSpec((block_rows, _LANES), lambda i: (i, 0)),
        compiler_params=compiler_params,
        cost_estimate=pl.CostEstimate(
            flops=20 * n_pad,
            transcendentals=3 * n_pad,
            bytes_accessed=in_bytes + 4 * n_pad,
        ),
    )(pred2d, true2d)
    return loss2d.reshape(-1)[:n].reshape(pred.shape)


def _ref_focal_loss(pred, true, gamma=1.5, alpha=0.25, reduction="mean"):
    # Pure-JAX reference (matches PyTorch FocalLoss(BCEWithLogitsLoss())).
    x = pred.astype(jnp.float32)
    z = true.astype(jnp.float32)
    bce = jnp.maximum(x, 0.0) - x * z + jnp.log1p(jnp.exp(-jnp.abs(x)))
    p = jax.nn.sigmoid(x)
    p_t = z * p + (1 - z) * (1 - p)
    af = z * alpha + (1 - z) * (1 - alpha)
    mf = (1.0 - p_t) ** gamma
    loss = bce * af * mf
    if reduction == "mean":
        return jnp.mean(loss)
    if reduction == "sum":
        return jnp.sum(loss)
    return loss


if __name__ == "__main__":
    key = jax.random.PRNGKey(0)
    k1, k2 = jax.random.split(key)

    # Small NCHW shapes: batch=2, channels=4, spatial=16x16.
    pred = jax.random.normal(k1, (2, 4, 16, 16), dtype=jnp.float32)
    true = (jax.random.uniform(k2, (2, 4, 16, 16)) > 0.5).astype(jnp.float32)

    # 'mean' path (the common case: partial-sum kernel).
    out_mean = focal_loss(pred, true, gamma=1.5, alpha=0.25, reduction="mean")
    out_mean = jax.block_until_ready(out_mean)
    ref_mean = _ref_focal_loss(pred, true, reduction="mean")
    assert jnp.allclose(out_mean, ref_mean, atol=1e-5, rtol=1e-5), (out_mean, ref_mean)

    # 'none' path (elementwise kernel).
    out_none = focal_loss(pred, true, gamma=1.5, alpha=0.25, reduction="none")
    out_none = jax.block_until_ready(out_none)
    ref_none = _ref_focal_loss(pred, true, reduction="none")
    assert jnp.allclose(out_none, ref_none, atol=1e-5, rtol=1e-5)

    print("KERNEL_OK")
</pallas_src>

<mosaic_0001>
module attributes {stable_mosaic.version = 11 : i64} {
  func.func @_focal_sum_kernel(%arg0: i32, %arg1: memref<32x512xf32, #tpu.memory_space<vmem>>, %arg2: memref<32x512xf32, #tpu.memory_space<vmem>>, %arg3: memref<1x1xf32, #tpu.memory_space<smem>>) attributes {dimension_semantics = [#tpu.dimension_semantics<parallel>], iteration_bounds = array<i64: 1>, scalar_prefetch = 0 : i64, scratch_operands = 0 : i64, tpu.core_type = #tpu.core_type<tc>, window_params = [{transform_indices = @transform_0, window_bounds = array<i64: 32, 512>}, {transform_indices = @transform_1, window_bounds = array<i64: 32, 512>}, {transform_indices = @transform_2, window_bounds = array<i64: 1, 1>}]} {
    %c0 = arith.constant 0 : index
    %c0_0 = arith.constant 0 : index
    %0 = vector.load %arg1[%c0, %c0_0] : memref<32x512xf32, #tpu.memory_space<vmem>>, vector<32x512xf32>
    %c0_1 = arith.constant 0 : index
    %c0_2 = arith.constant 0 : index
    %1 = vector.load %arg2[%c0_1, %c0_2] : memref<32x512xf32, #tpu.memory_space<vmem>>, vector<32x512xf32>
    %2 = math.absf %0 : vector<32x512xf32>
    %cst = arith.constant 0.000000e+00 : f32
    %3 = vector.broadcast %cst : f32 to vector<32x512xf32>
    %4 = arith.subf %3, %2 : vector<32x512xf32>
    %5 = math.exp %4 : vector<32x512xf32>
    %cst_3 = arith.constant 0.000000e+00 : f32
    %6 = vector.broadcast %cst_3 : f32 to vector<32x512xf32>
    %7 = arith.maximumf %0, %6 : vector<32x512xf32>
    %8 = arith.mulf %0, %1 : vector<32x512xf32>
    %9 = arith.subf %7, %8 : vector<32x512xf32>
    %10 = math.log1p %5 : vector<32x512xf32>
    %11 = arith.addf %9, %10 : vector<32x512xf32>
    %cst_4 = arith.constant 1.000000e+00 : f32
    %12 = vector.broadcast %cst_4 : f32 to vector<32x512xf32>
    %13 = arith.addf %12, %5 : vector<32x512xf32>
    %cst_5 = arith.constant 1.000000e+00 : f32
    %14 = vector.broadcast %cst_5 : f32 to vector<32x512xf32>
    %15 = arith.divf %14, %13 : vector<32x512xf32>
    %cst_6 = arith.constant 0.000000e+00 : f32
    %16 = vector.broadcast %cst_6 : f32 to vector<32x512xf32>
    %17 = arith.cmpf oge, %0, %16 : vector<32x512xf32>
    %18 = arith.mulf %5, %15 : vector<32x512xf32>
    %19 = arith.select %17, %15, %18 : vector<32x512xi1>, vector<32x512xf32>
    %20 = arith.mulf %1, %19 : vector<32x512xf32>
    %cst_7 = arith.constant 1.000000e+00 : f32
    %21 = vector.broadcast %cst_7 : f32 to vector<32x512xf32>
    %22 = arith.subf %21, %1 : vector<32x512xf32>
    %cst_8 = arith.constant 1.000000e+00 : f32
    %23 = vector.broadcast %cst_8 : f32 to vector<32x512xf32>
    %24 = arith.subf %23, %19 : vector<32x512xf32>
    %25 = arith.mulf %22, %24 : vector<32x512xf32>
    %26 = arith.addf %20, %25 : vector<32x512xf32>
    %cst_9 = arith.constant 2.500000e-01 : f32
    %27 = vector.broadcast %cst_9 : f32 to vector<32x512xf32>
    %28 = arith.mulf %1, %27 : vector<32x512xf32>
    %cst_10 = arith.constant 1.000000e+00 : f32
    %29 = vector.broadcast %cst_10 : f32 to vector<32x512xf32>
    %30 = arith.subf %29, %1 : vector<32x512xf32>
    %cst_11 = arith.constant 7.500000e-01 : f32
    %31 = vector.broadcast %cst_11 : f32 to vector<32x512xf32>
    %32 = arith.mulf %30, %31 : vector<32x512xf32>
    %33 = arith.addf %28, %32 : vector<32x512xf32>
    %cst_12 = arith.constant 1.000000e+00 : f32
    %34 = vector.broadcast %cst_12 : f32 to vector<32x512xf32>
    %35 = arith.subf %34, %26 : vector<32x512xf32>
    %36 = math.sqrt %35 : vector<32x512xf32>
    %37 = arith.mulf %35, %36 : vector<32x512xf32>
    %38 = arith.mulf %11, %33 : vector<32x512xf32>
    %39 = arith.mulf %38, %37 : vector<32x512xf32>
    %40 = vector.shape_cast %39 : vector<32x512xf32> to vector<1x32x512xf32>
    %cst_13 = arith.constant dense<0.000000e+00> : vector<1xf32>
    %41 = vector.multi_reduction <add>, %40, %cst_13 [1, 2] : vector<1x32x512xf32> to vector<1xf32>
    %42 = vector.shape_cast %41 : vector<1xf32> to vector<1x1x1xf32>
    %43 = vector.extract %42[0, 0, 0] : f32 from vector<1x1x1xf32>
    %c0_14 = arith.constant 0 : index
    %c0_15 = arith.constant 0 : index
    %44 = memref.load %arg3[%c0_14, %c0_15] : memref<1x1xf32, #tpu.memory_space<smem>>
    memref.store %43, %arg3[%c0_14, %c0_15] : memref<1x1xf32, #tpu.memory_space<smem>>
    return
  }
  func.func @transform_0(%arg0: i32) -> (i32, i32) {
    %c0_i32 = arith.constant 0 : i32
    %c0_i32_0 = arith.constant 0 : i32
    return %arg0, %c0_i32 : i32, i32
  }
  func.func @transform_1(%arg0: i32) -> (i32, i32) {
    %c0_i32 = arith.constant 0 : i32
    %c0_i32_0 = arith.constant 0 : i32
    return %arg0, %c0_i32 : i32, i32
  }
  func.func @transform_2(%arg0: i32) -> (i32, i32) {
    %c0_i32 = arith.constant 0 : i32
    %c0_i32_0 = arith.constant 0 : i32
    return %arg0, %c0_i32 : i32, i32
  }
}

</mosaic_0001>

<bundles_post_ra>
// kernel: tpu_custom_call.1
= control target key start
LH: loop header
LB: loop body
LE: loop exit
PB: predicated region body
PF: predicated region fallthrough
CT: control target
= control target key end

     0   :  { %7 = vsyncpa [#allocation3], 0  ;;  %s2152_s0 = inlined_call_operand.hbm [shape: f32[32,512], index: 0, kind: input, shape index: {}]   ;;  %s2153_s1 = inlined_call_operand.hbm [shape: f32[32,512], index: 1, kind: input, shape index: {}]   ;;  %s2154_s2 = inlined_call_operand.hbm [shape: f32[1,1], index: 2, kind: output, shape index: {}]  }
   0x1   :  { %8 = vsyncpa [#allocation6], 0 }
   0x2   :  { %9 = vsyncpa [#allocation4], 0  ;;  %s980_s9 = smov [#allocation2]   ;;  %s920_s13 = scalar_lea.hbm %s2152_s0, 2048 }
   0x3   :  { %s15_s10 = sshll.u32 %s980_s9, 4  ;;  %p921_p0 = scmp.ne.s32.totalorder %s2152_s0, %s920_s13  ;;  %s16_s10 = int_to_ptr.vmem [resolvable:$true] %s15_s10 }
   0x4   :  { %p924_p1 = scmp.lt.u32.totalorder %s920_s13, %s2152_s0 }
   0x6   :  { %p926_p2 = pnand %p924_p1, %p921_p0 }
   0x8   :  { %929 = shalt.err (!%p926_p2)
}
   0x9   :  { %s930_s18 = scalar_lea.vmem %s16_s10, 2048  ;;  %p935_p4 = scmp.lt.s32.totalorder %s16_s10, %s16_s10 }
   0xa   :  { %p931_p3 = scmp.ne.s32.totalorder %s16_s10, %s930_s18  ;;  %p936_p5 = scmp.lt.s32.totalorder %s930_s18, %s930_s18 }
   0xc   :  { %p937_p6 = por %p936_p5, %p935_p4 }
   0xe   :  { %p938_p7 = pnand %p937_p6, %p931_p3 }
  0x10   :  { %941 = shalt.err (!%p938_p7)
}
  0x11   :  { %s981_s19 = smov 512   ;;  %s982_s20 = smov 32  }
  0x12   :  { %21 = dma.hbm_to_vmem [thread:$0]  %s2152_s0, 2048, %s16_s10, [#allocation3], %s981_s19, %s981_s19, %s982_s20  }
  0x13   :  { %s983_s23 = smov [#allocation5]   ;;  %s942_s27 = scalar_lea.hbm %s2153_s1, 2048 }
  0x14   :  { %s27_s24 = sshll.u32 %s983_s23, 4  ;;  %p943_p8 = scmp.ne.s32.totalorder %s2153_s1, %s942_s27  ;;  %s28_s24 = int_to_ptr.vmem [resolvable:$true] %s27_s24 }
  0x15   :  { %p946_p9 = scmp.lt.u32.totalorder %s942_s27, %s2153_s1 }
  0x17   :  { %p948_p10 = pnand %p946_p9, %p943_p8 }
  0x19   :  { %951 = shalt.err (!%p948_p10)
}
  0x1a   :  { %s952_s4 = scalar_lea.vmem %s28_s24, 2048  ;;  %p957_p12 = scmp.lt.s32.totalorder %s28_s24, %s28_s24 }
  0x1b   :  { %p953_p11 = scmp.ne.s32.totalorder %s28_s24, %s952_s4  ;;  %p958_p13 = scmp.lt.s32.totalorder %s952_s4, %s952_s4 }
  0x1d   :  { %p959_p0 = por %p958_p13, %p957_p12 }
  0x1f   :  { %p960_p1 = pnand %p959_p0, %p953_p11 }
  0x21   :  { %963 = shalt.err (!%p960_p1)
}
  0x22   :  { %33 = dma.hbm_to_vmem [thread:$0]  %s2153_s1, 2048, %s28_s24, [#allocation6], %s981_s19, %s981_s19, %s982_s20  }
  0x23   :  { %974 = dma.done.wait [#allocation3], 2048  }
  0x24   :  { %975 = vsyncadd [#allocation3], 4294965248 }
  0x25   :  { %976 = dma.done.wait [#allocation6], 2048  }
  0x26   :  { %977 = vsyncadd [#allocation6], 4294965248  ;;  %v1024_v0 = vld [vmem:[#allocation2] sm:$0xff]  ;;  %v1026_v1 = vld [vmem:[#allocation2 + $0x8] sm:$0xff]  ;;  %s964_s8 = scalar_lea.hbm %s2154_s2, 16 }
  0x27   :  { %2240 = vst [vmem:[#allocation11_spill] sm:$0xff] %v1024_v0  ;;  %2241 = vst [vmem:[#allocation12_spill] sm:$0xff] %v1026_v1  ;;  %v1028_v2 = vld [vmem:[#allocation2 + $0x10] sm:$0xff]  ;;  %v1030_v3 = vld [vmem:[#allocation2 + $0x18] sm:$0xff]  ;;  %v72_v7 = vand.u32 2147483647, %v1024_v0  ;;  %p965_p2 = scmp.ne.s32.totalorder %s2154_s2, %s964_s8  ;;  %p968_p3 = scmp.lt.u32.totalorder %s964_s8, %s2154_s2 }
  0x28   :  { %2242 = vst [vmem:[#allocation13_spill] sm:$0xff] %v1028_v2  ;;  %2243 = vst [vmem:[#allocation14_spill] sm:$0xff] %v1030_v3  ;;  %v1032_v4 = vld [vmem:[#allocation2 + $0x20] sm:$0xff]  ;;  %v1034_v5 = vld [vmem:[#allocation2 + $0x28] sm:$0xff]  ;;  %v73_v8 = vand.u32 2147483647, %v1026_v1 }
  0x29   :  { %2244 = vst [vmem:[#allocation15_spill] sm:$0xff] %v1032_v4  ;;  %2245 = vst [vmem:[#allocation16_spill] sm:$0xff] %v1034_v5  ;;  %v1036_v6 = vld [vmem:[#allocation2 + $0x30] sm:$0xff]  ;;  %v74_v9 = vand.u32 2147483647, %v1028_v2  ;;  %v1044_v13 = vld [vmem:[#allocation2 + $0x38] sm:$0xff]  ;;  %p970_p4 = pnand %p968_p3, %p965_p2 }
  0x2a   :  { %2246 = vst [vmem:[#allocation17_spill] sm:$0xff] %v1036_v6  ;;  %v75_v10 = vand.u32 2147483647, %v1030_v3  ;;  %v76_v11 = vand.u32 2147483647, %v1032_v4  ;;  %2247 = vst [vmem:[#allocation18_spill] sm:$0xff] %v1044_v13 }
  0x2b   :  { %v1046_v14 = vld [vmem:[#allocation2 + $0x40] sm:$0xff]  ;;  %v1048_v15 = vld [vmem:[#allocation2 + $0x48] sm:$0xff]  ;;  %v77_v16 = vand.u32 2147483647, %v1034_v5  ;;  %v1052_v18 = vld [vmem:[#allocation2 + $0x50] sm:$0xff]  ;;  %v88_v23 = vsub.f32 0.0, %v72_v7 }
  0x2c   :  { %2248 = vst [vmem:[#allocation19_spill] sm:$0xff] %v1046_v14  ;;  %2249 = vst [vmem:[#allocation20_spill] sm:$0xff] %v1048_v15  ;;  %v1054_v19 = vld [vmem:[#allocation2 + $0x58] sm:$0xff]  ;;  %v1056_v20 = vld [vmem:[#allocation2 + $0x60] sm:$0xff]  ;;  %v78_v22 = vand.u32 2147483647, %v1036_v6 }
  0x2d   :  { %2250 = vst [vmem:[#allocation21_spill] sm:$0xff] %v1052_v18  ;;  %2251 = vst [vmem:[#allocation22_spill] sm:$0xff] %v1054_v19  ;;  %v1058_v21 = vld [vmem:[#allocation5] sm:$0xff]  ;;  %v1061_v24 = vld [vmem:[#allocation2 + $0x68] sm:$0xff]  ;;  %v89_v29 = vsub.f32 0.0, %v73_v8  ;;  %v90_v30 = vsub.f32 0.0, %v74_v9 }
  0x2e   :  { %2252 = vst [vmem:[#allocation23_spill] sm:$0xff] %v1056_v20  ;;  %2253 = vst [vmem:[#allocation24_spill] sm:$0xff] %v1058_v21  ;;  %v1063_v25 = vld [vmem:[#allocation2 + $0x70] sm:$0xff]  ;;  %v1065_v26 = vld [vmem:[#allocation5 + $0x8] sm:$0xff]  ;;  %v91_v31 = vsub.f32 0.0, %v75_v10  ;;  %v1073_v32 = vmul.f32 %v1058_v21, %v1024_v0  ;;  %v92_v36 = vsub.f32 0.0, %v76_v11 }
  0x2f   :  { %2254 = vst [vmem:[#allocation25_spill] sm:$0xff] %v1061_v24  ;;  %2255 = vst [vmem:[#allocation26_spill] sm:$0xff] %v1063_v25  ;;  %v1067_v27 = vld [vmem:[#allocation5 + $0x10] sm:$0xff]  ;;  %v1069_v28 = vld [vmem:[#allocation5 + $0x18] sm:$0xff]  ;;  %v1083_v37 = vmul.f32 %v1065_v26, %v1026_v1  ;;  %v79_v43 = vand.u32 2147483647, %v1044_v13 }
  0x30   :  { %2256 = vst [vmem:[#allocation27_spill] sm:$0xff] %v1065_v26  ;;  %2257 = vst [vmem:[#allocation28_spill] sm:$0xff] %v1067_v27  ;;  %v1075_v33 = vld [vmem:[#allocation2 + $0x78] sm:$0xff]  ;;  %v1077_v34 = vld [vmem:[#allocation5 + $0x20] sm:$0xff]  ;;  %v1087_v38 = vmul.f32 %v1067_v27, %v1028_v2  ;;  %v1091_v39 = vmul.f32 %v1069_v28, %v1030_v3  ;;  %v93_v44 = vsub.f32 0.0, %v77_v16  ;;  %v94_v51 = vsub.f32 0.0, %v78_v22 }
  0x31   :  { %2258 = vst [vmem:[#allocation29_spill] sm:$0xff] %v1069_v28  ;;  %2259 = vst [vmem:[#allocation30_spill] sm:$0xff] %v1075_v33  ;;  %v1079_v35 = vld [vmem:[#allocation5 + $0x28] sm:$0xff]  ;;  %v1093_v40 = vld [vmem:[#allocation5 + $0x30] sm:$0xff]  ;;  %v1102_v45 = vmul.f32 %v1077_v34, %v1032_v4  ;;  %v80_v49 = vand.u32 2147483647, %v1046_v14 }
  0x32   :  { %2260 = vst [vmem:[#allocation31_spill] sm:$0xff] %v1077_v34  ;;  %2261 = vst [vmem:[#allocation32_spill] sm:$0xff] %v1079_v35  ;;  %v1095_v41 = vld [vmem:[#allocation5 + $0x38] sm:$0xff]  ;;  %v1097_v42 = vld [vmem:[#allocation5 + $0x40] sm:$0xff]  ;;  %v1106_v46 = vmul.f32 %v1079_v35, %v1034_v5  ;;  %v81_v50 = vand.u32 2147483647, %v1048_v15  ;;  %v1116_v52 = vmul.f32 %v1093_v40, %v1036_v6 }
  0x33   :  { %2262 = vst [vmem:[#allocation33_spill] sm:$0xff] %v1093_v40  ;;  %2263 = vst [vmem:[#allocation34_spill] sm:$0xff] %v1095_v41  ;;  %v1108_v47 = vld [vmem:[#allocation5 + $0x48] sm:$0xff]  ;;  %v1110_v48 = vld [vmem:[#allocation5 + $0x50] sm:$0xff]  ;;  %v82_v53 = vand.u32 2147483647, %v1052_v18  ;;  %v1123_v56 = vmul.f32 %v1095_v41, %v1044_v13  ;;  %v1129_v60 = vmul.f32 %v1097_v42, %v1046_v14 }
  0x34   :  { %2264 = vst [vmem:[#allocation35_spill] sm:$0xff] %v1097_v42  ;;  %2265 = vst [vmem:[#allocation36_spill] sm:$0xff] %v1108_v47  ;;  %v83_v54 = vand.u32 2147483647, %v1054_v19  ;;  %v84_v55 = vand.u32 2147483647, %v1056_v20  ;;  %v1134_v63 = vmul.f32 %v1108_v47, %v1048_v15  ;;  %v1138_v7 = vmul.f32 %v1110_v48, %v1052_v18 }
  0x35   :  { %2266 = vst [vmem:[#allocation37_spill] sm:$0xff] %v1110_v48  ;;  %v85_v57 = vand.u32 2147483647, %v1061_v24  ;;  %v86_v58 = vand.u32 2147483647, %v1063_v25  ;;  %v95_v8 = vsub.f32 0.0, %v79_v43 }
  0x36   :  { %v104_v59 = vmul.f32 1.442695, %v88_v23  ;;  %v87_v61 = vand.u32 2147483647, %v1075_v33  ;;  %v106_v62 = vmul.f32 1.442695, %v89_v29 }
  0x37   :  { %v96_v9 = vsub.f32 0.0, %v80_v49  ;;  %v97_v10 = vsub.f32 0.0, %v81_v50  ;;  %v108_v11 = vmul.f32 1.442695, %v90_v30  ;;  %v98_v16 = vsub.f32 0.0, %v82_v53  ;;  %v1140_v12 = vld [vmem:[#allocation5 + $0x58] sm:$0xff] }
  0x38   :  { %v99_v22 = vsub.f32 0.0, %v83_v54  ;;  %v100_v23 = vsub.f32 0.0, %v84_v55  ;;  %v110_v17 = vmul.f32 1.442695, %v91_v31  ;;  %2267 = vst [vmem:[#allocation38_spill] sm:$0xff] %v1140_v12  ;;  %v101_v42 = vsub.f32 0.0, %v85_v57 }
  0x39   :  { %v102_v29 = vsub.f32 0.0, %v86_v58  ;;  %792 = vpow2.f32 %v104_v59  ;;  %v112_v41 = vmul.f32 1.442695, %v92_v36  ;;  %v103_v47 = vsub.f32 0.0, %v87_v61 }
  0x3a   :  { %794 = vpow2.f32 %v106_v62  ;;  %v114_v40 = vmul.f32 1.442695, %v93_v44  ;;  %v1144_v48 = vmul.f32 %v1140_v12, %v1054_v19  ;;  %v116_v43 = vmul.f32 1.442695, %v94_v51 }
  0x3b   :  { %796 = vpow2.f32 %v108_v11  ;;  %v118_v30 = vmul.f32 1.442695, %v95_v8  ;;  %v120_v49 = vmul.f32 1.442695, %v96_v9  ;;  %v122_v50 = vmul.f32 1.442695, %v97_v10 }
  0x3c   :  { %798 = vpow2.f32 %v110_v17  ;;  %v124_v31 = vmul.f32 1.442695, %v98_v16  ;;  %v126_v53 = vmul.f32 1.442695, %v99_v22  ;;  %v128_v54 = vmul.f32 1.442695, %v100_v23 }
  0x3d   :  { %800 = vpow2.f32 %v112_v41  ;;  %v130_v55 = vmul.f32 1.442695, %v101_v42  ;;  %v132_v57 = vmul.f32 1.442695, %v102_v29  ;;  %v1146_v36 = vmul.f32 1.442695, %v103_v47 }
  0x3e   :  { %802 = vpow2.f32 %v114_v40  ;;  %v138_v44 = vmax.f32 %v1028_v2, 0.0  ;;  %v139_v58 = vmax.f32 %v1030_v3, 0.0  ;;  %v140_v51 = vmax.f32 %v1032_v4, 0.0  ;;  %v1159_v8 = vld [vmem:[#allocation5 + $0x60] sm:$0xff]  ;;  %v1161_v9 = vld [vmem:[#allocation5 + $0x68] sm:$0xff]  ;;  %v1163_v10 = vld [vmem:[#allocation5 + $0x70] sm:$0xff] }
  0x3f   :  { %804 = vpow2.f32 %v116_v43  ;;  %v141_v59 = vmax.f32 %v1034_v5, 0.0  ;;  %v142_v17 = vmax.f32 %v1036_v6, 0.0  ;;  %v143_v41 = vmax.f32 %v1044_v13, 0.0  ;;  %2268 = vst [vmem:[#allocation39_spill] sm:$0xff] %v1159_v8  ;;  %2269 = vst [vmem:[#allocation40_spill] sm:$0xff] %v1161_v9  ;;  %v1170_v29 = vld [vmem:[#allocation5 + $0x78] sm:$0xff] }
  0x40   :  { %806 = vpow2.f32 %v118_v30  ;;  %v144_v42 = vmax.f32 %v1046_v14, 0.0  ;;  %v145_v40 = vmax.f32 %v1048_v15, 0.0  ;;  %v146_v47 = vmax.f32 %v1052_v18, 0.0  ;;  %2270 = vst [vmem:[#allocation41_spill] sm:$0xff] %v1163_v10  ;;  %2272 = vst [vmem:[#allocation43_spill] sm:$0xff] %v1170_v29 }
  0x41   :  { %808 = vpow2.f32 %v120_v49  ;;  %v147_v61 = vmax.f32 %v1054_v19, 0.0  ;;  %v148_v62 = vmax.f32 %v1056_v20, 0.0  ;;  %v149_v11 = vmax.f32 %v1061_v24, 0.0 }
  0x42   :  { %810 = vpow2.f32 %v122_v50  ;;  %v150_v16 = vmax.f32 %v1063_v25, 0.0  ;;  %v151_v22 = vmax.f32 %v1075_v33, 0.0  ;;  %v164_v43 = vmul.f32 %v1159_v8, %v1056_v20 }
  0x43   :  { %v1168_v23 = vpop.eup %792  ;;  %812 = vpow2.f32 %v124_v31  ;;  %v165_v30 = vmul.f32 %v1161_v9, %v1061_v24  ;;  %v166_v49 = vmul.f32 %v1163_v10, %v1063_v25  ;;  %v167_v12 = vmul.f32 %v1170_v29, %v1075_v33 }
  0x44   :  { %2271 = vst [vmem:[#allocation42_spill] sm:$0xff] %v1168_v23  ;;  %v1178_v50 = vpop.eup %794  ;;  %814 = vpow2.f32 %v126_v53  ;;  %v2274_v35 = vmax.f32 %v1024_v0, 0.0  ;;  %v2275_v31 = vmax.f32 %v1026_v1, 0.0  ;;  %v1195_v10 = vsub.f32 %v138_v44, %v1087_v38 }
  0x45   :  { %2273 = vst [vmem:[#allocation44_spill] sm:$0xff] %v1178_v50  ;;  %v1192_v9 = vpop.eup %796  ;;  %816 = vpow2.f32 %v128_v54  ;;  %v1198_v53 = vsub.f32 %v139_v58, %v1091_v39  ;;  %v1201_v29 = vsub.f32 %v140_v51, %v1102_v45  ;;  %v1217_v39 = vsub.f32 %v143_v41, %v1123_v56 }
  0x46   :  { %v1185_v34 = vsub.f32 %v2274_v35, %v1073_v32  ;;  %v1190_v8 = vsub.f32 %v2275_v31, %v1083_v37  ;;  %2276 = vst [vmem:[#allocation45_spill] sm:$0xff] %v1192_v9  ;;  %v1203_v33 = vpop.eup %798  ;;  %818 = vpow2.f32 %v130_v55  ;;  %v1206_v32 = vsub.f32 %v141_v59, %v1106_v46 }
  0x47   :  { %2277 = vst [vmem:[#allocation46_spill] sm:$0xff] %v1203_v33  ;;  %v1209_v35 = vsub.f32 %v142_v17, %v1116_v52  ;;  %v1212_v37 = vadd.f32 1.0, %v1168_v23  ;;  %v1214_v38 = vpop.eup %800  ;;  %820 = vpow2.f32 %v132_v57  ;;  %2281 = vst [vmem:[#allocation50_spill] sm:$0xff] %v1217_v39  ;;  %v1220_v45 = vsub.f32 %v144_v42, %v1129_v60 }
  0x48   :  { %2278 = vst [vmem:[#allocation47_spill] sm:$0xff] %v1206_v32  ;;  %2280 = vst [vmem:[#allocation49_spill] sm:$0xff] %v1214_v38  ;;  %v1223_v54 = vadd.f32 1.0, %v1178_v50  ;;  %v1225_v46 = vpop.eup %802  ;;  %v1228_v52 = vsub.f32 %v145_v40, %v1134_v63  ;;  %v187_v55 = vmul.f32 -0.5, %v1168_v23  ;;  %v1233_v57 = vadd.f32 1.0, %v1192_v9 }
  0x49   :  { %2279 = vst [vmem:[#allocation48_spill] sm:$0xff] %v1209_v35  ;;  %2282 = vst [vmem:[#allocation51_spill] sm:$0xff] %v1220_v45  ;;  %822 = vlog2.f32 %v1212_v37  ;;  %v1235_v56 = vpop.eup %804  ;;  %v1238_v60 = vsub.f32 %v146_v47, %v1138_v7  ;;  %v1241_v44 = vsub.f32 %v147_v61, %v1144_v48  ;;  %v1243_v58 = vsub.f32 %v148_v62, %v164_v43 }
  0x4a   :  { %2283 = vst [vmem:[#allocation52_spill] sm:$0xff] %v1225_v46  ;;  %2284 = vst [vmem:[#allocation53_spill] sm:$0xff] %v1228_v52  ;;  %824 = vlog2.f32 %v1223_v54  ;;  %v1246_v63 = vpop.eup %806  ;;  %v196_v51 = vmul.f32 -0.5, %v1178_v50  ;;  %v205_v59 = vmul.f32 -0.5, %v1192_v9  ;;  %v1252_v17 = vadd.f32 1.0, %v1203_v33 }
  0x4b   :  { %2285 = vst [vmem:[#allocation54_spill] sm:$0xff] %v1235_v56  ;;  %2286 = vst [vmem:[#allocation55_spill] sm:$0xff] %v1238_v60  ;;  %826 = vlog2.f32 %v1233_v57  ;;  %v1254_v7 = vpop.eup %808  ;;  %v1256_v41 = vsub.f32 %v149_v11, %v165_v30  ;;  %v190_v48 = vand.u32 2147483647, %v1168_v23  ;;  %v199_v42 = vand.u32 2147483647, %v1178_v50 }
  0x4c   :  { %2287 = vst [vmem:[#allocation56_spill] sm:$0xff] %v1241_v44  ;;  %2288 = vst [vmem:[#allocation57_spill] sm:$0xff] %v1243_v58  ;;  %v214_v40 = vmul.f32 -0.5, %v1203_v33  ;;  %v1261_v47 = vpop.eup %810  ;;  %v1263_v61 = vsub.f32 %v150_v16, %v166_v49  ;;  %v188_v62 = vadd.f32 1.0, %v187_v55  ;;  %828 = vlog2.f32 %v1252_v17 }
  0x4d   :  { %2289 = vst [vmem:[#allocation58_spill] sm:$0xff] %v1246_v63  ;;  %2290 = vst [vmem:[#allocation59_spill] sm:$0xff] %v1254_v7  ;;  %v1267_v43 = vadd.f32 1.0, %v1214_v38  ;;  %v1269_v31 = vpop.eup %812  ;;  %830 = vpow2.f32 %v1146_v36  ;;  %v1272_v11 = vsub.f32 %v151_v22, %v167_v12  ;;  %v223_v30 = vmul.f32 -0.5, %v1214_v38 }
  0x4e   :  { %2291 = vst [vmem:[#allocation60_spill] sm:$0xff] %v1256_v41  ;;  %2292 = vst [vmem:[#allocation61_spill] sm:$0xff] %v1261_v47  ;;  %v232_v25 = vmul.f32 -0.5, %v1225_v46  ;;  %v1276_v24 = vpop.eup %814  ;;  %v197_v16 = vadd.f32 1.0, %v196_v51  ;;  %v206_v49 = vadd.f32 1.0, %v205_v59  ;;  %v1280_v55 = vadd.f32 1.0, %v1225_v46 }
  0x4f   :  { %2293 = vst [vmem:[#allocation62_spill] sm:$0xff] %v1263_v61  ;;  %2294 = vst [vmem:[#allocation63_spill] sm:$0xff] %v1269_v31  ;;  %832 = vlog2.f32 %v1267_v43  ;;  %v1282_v20 = vpop.eup %816  ;;  %vm1284_vm0 = vcmp.lt.f32.partialorder %v190_v48, 0.0004427343  ;;  %vm1288_vm1 = vcmp.lt.f32.partialorder %v199_v42, 0.0004427343  ;;  %v1300_v19 = vmul.f32 %v1168_v23, %v188_v62 }
  0x50   :  { %2295 = vst [vmem:[#allocation64_spill] sm:$0xff] %v1272_v11  ;;  %v208_v36 = vand.u32 2147483647, %v1192_v9  ;;  %v215_v22 = vadd.f32 1.0, %v214_v40  ;;  %v217_v51 = vand.u32 2147483647, %v1203_v33  ;;  %v1297_v11 = vpop.eup %818  ;;  %834 = vlog2.f32 %v1280_v55 }
  0x51   :  { %v1295_v59 = vadd.f32 1.0, %v1235_v56  ;;  %v226_v48 = vand.u32 2147483647, %v1214_v38  ;;  %v241_v42 = vmul.f32 -0.5, %v1235_v56  ;;  %v1305_v27 = vpop.eup %820  ;;  %v224_v26 = vadd.f32 1.0, %v223_v30  ;;  %v2347_v13 = vld [vmem:[#allocation47_spill] sm:$0xff] }
  0x52   :  { %v233_v40 = vadd.f32 1.0, %v232_v25  ;;  %v1309_v21 = vadd.f32 1.0, %v1246_v63  ;;  %v1312_v15 = vmul.f32 %v1178_v50, %v197_v16  ;;  %v1315_v62 = vmul.f32 %v1192_v9, %v206_v49 }
  0x53   :  { %836 = vlog2.f32 %v1295_v59  ;;  %v823_v18 = vpop.eup %822  ;;  %v235_v61 = vand.u32 2147483647, %v1225_v46  ;;  %v250_v23 = vmul.f32 -0.5, %v1246_v63  ;;  %vm1319_vm2 = vcmp.lt.f32.partialorder %v208_v36, 0.0004427343 }
  0x54   :  { %v825_v14 = vpop.eup %824  ;;  %v1324_v25 = vmul.f32 %v1203_v33, %v215_v22  ;;  %vm1326_vm3 = vcmp.lt.f32.partialorder %v217_v51, 0.0004427343  ;;  %838 = vlog2.f32 %v1309_v21  ;;  %vm1331_vm4 = vcmp.lt.f32.partialorder %v226_v48, 0.0004427343 }
  0x55   :  { %v827_v16 = vpop.eup %826  ;;  %v242_v9 = vadd.f32 1.0, %v241_v42  ;;  %v244_v36 = vand.u32 2147483647, %v1235_v56  ;;  %v1337_v50 = vadd.f32 1.0, %v1254_v7  ;;  %v259_v22 = vmul.f32 -0.5, %v1254_v7 }
  0x56   :  { %v1341_v51 = vmul.f32 %v1214_v38, %v224_v26  ;;  %v1344_v33 = vmul.f32 %v1225_v46, %v233_v40  ;;  %v253_v6 = vand.u32 2147483647, %v1246_v63  ;;  %v1348_v48 = vadd.f32 1.0, %v1261_v47  ;;  %v829_v5 = vpop.eup %828 }
  0x57   :  { %2306 = vst [vmem:[#allocation65_spill] sm:$0xff] %v1337_v50  ;;  %v1350_v42 = vmul.f32 0.6931472, %v823_v18  ;;  %v1352_v41 = vmul.f32 0.6931472, %v825_v14  ;;  %v251_v3 = vadd.f32 1.0, %v250_v23  ;;  %840 = vlog2.f32 %v1337_v50  ;;  %v1359_v26 = vpop.eup %830 }
  0x58   :  { %2307 = vst [vmem:[#allocation66_spill] sm:$0xff] %v1348_v48  ;;  %vm1354_vm5 = vcmp.lt.f32.partialorder %v235_v61, 0.0004427343  ;;  %v1361_v40 = vmul.f32 0.6931472, %v827_v16  ;;  %842 = vlog2.f32 %v1348_v48  ;;  %v268_v46 = vmul.f32 -0.5, %v1261_v47 }
  0x59   :  { %v1366_v18 = vadd.f32 1.0, %v1269_v31  ;;  %v833_v14 = vpop.eup %832  ;;  %v1369_v61 = vmul.f32 %v1235_v56, %v242_v9  ;;  %vm1371_vm6 = vcmp.lt.f32.partialorder %v244_v36, 0.0004427343  ;;  %v260_v23 = vadd.f32 1.0, %v259_v22 }
  0x5a   :  { %v262_v2 = vand.u32 2147483647, %v1254_v7  ;;  %v1376_v16 = vmul.f32 0.6931472, %v829_v5  ;;  %vm1378_vm7 = vcmp.lt.f32.partialorder %v253_v6, 0.0004427343  ;;  %v835_v0 = vpop.eup %834  ;;  %v1403_v9 = vmul.f32 %v1246_v63, %v251_v3 }
  0x5b   :  { %2310 = vst [vmem:[#allocation67_spill] sm:$0xff] %v1366_v18  ;;  %v271_v1 = vand.u32 2147483647, %v1261_v47  ;;  %844 = vlog2.f32 %v1366_v18  ;;  %v277_v6 = vmul.f32 -0.5, %v1269_v31  ;;  %v1394_v36 = vadd.f32 1.0, %v1276_v24 }
  0x5c   :  { %v1400_v18 = vmul.f32 0.6931472, %v833_v14  ;;  %v269_v44 = vadd.f32 1.0, %v268_v46  ;;  %v1406_v60 = vmul.f32 %v1254_v7, %v260_v23  ;;  %vm1408_vm8 = vcmp.lt.f32.partialorder %v262_v2, 0.0004427343 }
  0x5d   :  { %2315 = vst [vmem:[#allocation68_spill] sm:$0xff] %v1394_v36  ;;  %v837_v22 = vpop.eup %836  ;;  %v280_v52 = vand.u32 2147483647, %v1269_v31  ;;  %846 = vlog2.f32 %v1394_v36  ;;  %v1415_v48 = vadd.f32 1.0, %v1282_v20  ;;  %v1421_v46 = vmul.f32 0.6931472, %v835_v0 }
  0x5e   :  { %v839_v14 = vpop.eup %838  ;;  %vm1423_vm9 = vcmp.lt.f32.partialorder %v271_v1, 0.0004427343  ;;  %v286_v23 = vmul.f32 -0.5, %v1276_v24  ;;  %v1428_v56 = vmul.f32 0.6931472, %v837_v22  ;;  %v278_v7 = vadd.f32 1.0, %v277_v6 }
  0x5f   :  { %2318 = vst [vmem:[#allocation69_spill] sm:$0xff] %v1415_v48  ;;  %848 = vlog2.f32 %v1415_v48  ;;  %v1432_v63 = vadd.f32 1.0, %v1297_v11  ;;  %v1439_v1 = vmul.f32 %v1261_v47, %v269_v44  ;;  %v289_v3 = vand.u32 2147483647, %v1276_v24  ;;  %v2357_v6 = vld [vmem:[#allocation53_spill] sm:$0xff] }
  0x60   :  { %v295_v36 = vmul.f32 -0.5, %v1282_v20  ;;  %v1443_v45 = vmul.f32 0.6931472, %v839_v14  ;;  %vm1445_vm10 = vcmp.lt.f32.partialorder %v280_v52, 0.0004427343  ;;  %v1451_v48 = vadd.f32 1.0, %v1305_v27 }
  0x61   :  { %2321 = vst [vmem:[#allocation70_spill] sm:$0xff] %v1432_v63  ;;  %v841_v22 = vpop.eup %840  ;;  %850 = vlog2.f32 %v1432_v63  ;;  %v237_v44 = vsel %vm1354_vm5, %v1344_v33, %v1421_v46  ;;  %v287_v47 = vadd.f32 1.0, %v286_v23  ;;  %v304_v50 = vmul.f32 -0.5, %v1297_v11  ;;  %v2361_v33 = vld [vmem:[#allocation56_spill] sm:$0xff] }
  0x62   :  { %2324 = vst [vmem:[#allocation71_spill] sm:$0xff] %v1451_v48  ;;  %v843_v0 = vpop.eup %842  ;;  %v313_v14 = vmul.f32 -0.5, %v1305_v27  ;;  %v246_v52 = vsel %vm1371_vm6, %v1369_v61, %v1428_v56  ;;  %v1464_v63 = vmul.f32 %v1269_v31, %v278_v7  ;;  %v298_v39 = vand.u32 2147483647, %v1282_v20 }
  0x63   :  { %852 = vlog2.f32 %v1451_v48  ;;  %v258_v4 = vmul.f32 0.6931472, %v841_v22  ;;  %vm1468_vm11 = vcmp.lt.f32.partialorder %v289_v3, 0.0004427343  ;;  %v296_v46 = vadd.f32 1.0, %v295_v36 }
  0x64   :  { %v1473_v23 = vadd.f32 1.0, %v1359_v26  ;;  %v255_v38 = vsel %vm1378_vm7, %v1403_v9, %v1443_v45  ;;  %v267_v56 = vmul.f32 0.6931472, %v843_v0  ;;  %v307_v7 = vand.u32 2147483647, %v1297_v11 }
  0x65   :  { %v845_v35 = vpop.eup %844  ;;  %v322_v61 = vmul.f32 -0.5, %v1359_v26  ;;  %v288_v22 = vmul.f32 %v1276_v24, %v287_v47  ;;  %v305_v3 = vadd.f32 1.0, %v304_v50  ;;  %v314_v31 = vadd.f32 1.0, %v313_v14 }
  0x66   :  { %854 = vlog2.f32 %v1473_v23  ;;  %v276_v48 = vmul.f32 0.6931472, %v845_v35  ;;  %vm1483_vm12 = vcmp.lt.f32.partialorder %v298_v39, 0.0004427343  ;;  %v316_v58 = vand.u32 2147483647, %v1305_v27 }
  0x67   :  { %v847_v36 = vpop.eup %846  ;;  %856 = vrcp.f32 %v1212_v37  ;;  %v264_v45 = vsel %vm1408_vm8, %v1406_v60, %v258_v4  ;;  %v297_v47 = vmul.f32 %v1282_v20, %v296_v46  ;;  %v325_v50 = vand.u32 2147483647, %v1359_v26 }
  0x68   :  { %858 = vrcp.f32 %v1223_v54  ;;  %v273_v35 = vsel %vm1423_vm9, %v1439_v1, %v267_v56  ;;  %vm1498_vm13 = vcmp.lt.f32.partialorder %v307_v7, 0.0004427343  ;;  %v323_v37 = vadd.f32 1.0, %v322_v61  ;;  %v2364_v7 = vld [vmem:[#allocation68_spill] sm:$0xff]  ;;  %v2365_v61 = vld [vmem:[#allocation11_spill] sm:$0xff]  ;;  %v2372_v39 = vld [vmem:[#allocation70_spill] sm:$0xff] }
  0x69   :  { %v849_v9 = vpop.eup %848  ;;  %860 = vrcp.f32 %v1233_v57  ;;  %v285_v5 = vmul.f32 0.6931472, %v847_v36  ;;  %v306_v60 = vmul.f32 %v1297_v11, %v305_v3  ;;  %v315_v0 = vmul.f32 %v1305_v27, %v314_v31  ;;  %v2381_v1 = vld [vmem:[#allocation19_spill] sm:$0xff] }
  0x6a   :  { %862 = vrcp.f32 %v1252_v17  ;;  %v282_v2 = vsel %vm1445_vm10, %v1464_v63, %v276_v48  ;;  %vm1509_vm14 = vcmp.lt.f32.partialorder %v316_v58, 0.0004427343  ;;  %v2333_v57 = vsel %vm1284_vm0, %v1300_v19, %v1350_v42  ;;  %v2353_v42 = vld [vmem:[#allocation65_spill] sm:$0xff] }
  0x6b   :  { %v851_v54 = vpop.eup %850  ;;  %v1519_v14 = vadd.f32 %v2333_v57, %v1185_v34  ;;  %864 = vrcp.f32 %v1267_v43  ;;  %v294_v17 = vmul.f32 0.6931472, %v849_v9  ;;  %vm1522_vm15 = vcmp.lt.f32.partialorder %v325_v50, 0.0004427343  ;;  %v2368_v58 = vld [vmem:[#allocation57_spill] sm:$0xff]  ;;  %v2377_v57 = vld [vmem:[#allocation71_spill] sm:$0xff] }
  0x6c   :  { %v2335_v31 = vmov 0  ;;  %v2338_v63 = vsel %vm1288_vm1, %v1312_v15, %v1352_v41  ;;  %866 = vrcp.f32 %v1280_v55  ;;  %v1536_v28 = vmul.f32 %v1359_v26, %v323_v37  ;;  %v2371_v50 = vld [vmem:[#allocation13_spill] sm:$0xff]  ;;  %v2373_v37 = vld [vmem:[#allocation14_spill] sm:$0xff] }
  0x6d   :  { %2334 = vst [vmem:[#allocation72_spill] sm:$0xff] %v1519_v14  ;;  %v2336_v31 = vsel %vm1522_vm15, 4294967295, %v2335_v31  ;;  %v1532_v48 = vadd.f32 %v2338_v63, %v1190_v8  ;;  %v853_v19 = vpop.eup %852  ;;  %v2341_v34 = vsel %vm1319_vm2, %v1315_v62, %v1361_v40  ;;  %v2343_v15 = vsel %vm1326_vm3, %v1324_v25, %v1376_v16  ;;  %v2379_v63 = vld [vmem:[#allocation17_spill] sm:$0xff] }
  0x6e   :  { %2337 = vst [vmem:[#allocation73_spill] sm:$0xff] %v2336_v31  ;;  %2340 = vst [vmem:[#allocation75_spill] sm:$0xff] %v1536_v28  ;;  %v1544_v43 = vadd.f32 %v2341_v34, %v1195_v10  ;;  %v1552_v8 = vadd.f32 %v2343_v15, %v1198_v53  ;;  %868 = vrcp.f32 %v1295_v59  ;;  %v291_v41 = vsel %vm1468_vm11, %v288_v22, %v285_v5  ;;  %v2349_v53 = vld [vmem:[#allocation48_spill] sm:$0xff]  ;;  %v2351_v59 = vld [vmem:[#allocation50_spill] sm:$0xff] }
  0x6f   :  { %2339 = vst [vmem:[#allocation74_spill] sm:$0xff] %v1532_v48  ;;  %v303_v55 = vmul.f32 0.6931472, %v851_v54  ;;  %v2345_v10 = vsel %vm1331_vm4, %v1341_v51, %v1400_v18  ;;  %870 = vrcp.f32 %v1309_v21  ;;  %v1567_v62 = vadd.f32 %v237_v44, %v2347_v13  ;;  %v2356_v21 = vld [vmem:[#allocation66_spill] sm:$0xff]  ;;  %v2366_v22 = vld [vmem:[#allocation12_spill] sm:$0xff]  ;;  %v2374_v5 = vld [vmem:[#allocation15_spill] sm:$0xff] }
  0x70   :  { %2342 = vst [vmem:[#allocation76_spill] sm:$0xff] %v1544_v43  ;;  %2344 = vst [vmem:[#allocation77_spill] sm:$0xff] %v1552_v8  ;;  %v1563_v12 = vadd.f32 %v2345_v10, %v1201_v29  ;;  %v1570_v30 = vadd.f32 %v246_v52, %v2349_v53  ;;  %v1573_v25 = vadd.f32 %v255_v38, %v2351_v59  ;;  %872 = vrcp.f32 %v2353_v42  ;;  %v855_v40 = vpop.eup %854  ;;  %v2354_v29 = vld [vmem:[#allocation51_spill] sm:$0xff]  ;;  %v2375_v54 = vld [vmem:[#allocation60_spill] sm:$0xff] }
  0x71   :  { %2348 = vst [vmem:[#allocation47_spill] sm:$0xff] %v1567_v62  ;;  %v300_v49 = vsel %vm1483_vm12, %v297_v47, %v294_v17  ;;  %v312_v51 = vmul.f32 0.6931472, %v853_v19  ;;  %v1579_v18 = vadd.f32 %v264_v45, %v2354_v29  ;;  %874 = vrcp.f32 %v2356_v21  ;;  %v857_v16 = vpop.eup %856  ;;  %v2359_v52 = vld [vmem:[#allocation55_spill] sm:$0xff]  ;;  %v2370_v47 = vld [vmem:[#allocation69_spill] sm:$0xff]  ;;  %v2378_v17 = vld [vmem:[#allocation16_spill] sm:$0xff] }
  0x72   :  { %2346 = vst [vmem:[#allocation78_spill] sm:$0xff] %v1563_v12  ;;  %2350 = vst [vmem:[#allocation48_spill] sm:$0xff] %v1570_v30  ;;  %v1583_v44 = vadd.f32 %v273_v35, %v2357_v6  ;;  %v1586_v4 = vadd.f32 %v282_v2, %v2359_v52  ;;  %v1589_v46 = vadd.f32 %v291_v41, %v2361_v33  ;;  %v2363_v38 = vld [vmem:[#allocation67_spill] sm:$0xff]  ;;  %v859_v32 = vpop.eup %858  ;;  %vm392_vm0 = vcmp.ge.f32.partialorder %v2365_v61, 0.0  ;;  %v2382_v34 = vld [vmem:[#allocation42_spill] sm:$0xff] }
  0x73   :  { %2352 = vst [vmem:[#allocation50_spill] sm:$0xff] %v1573_v25  ;;  %2355 = vst [vmem:[#allocation65_spill] sm:$0xff] %v1579_v18  ;;  %876 = vrcp.f32 %v2363_v38  ;;  %v309_v56 = vsel %vm1498_vm13, %v306_v60, %v303_v55  ;;  %vm393_vm1 = vcmp.ge.f32.partialorder %v2366_v22, 0.0  ;;  %v861_v3 = vpop.eup %860  ;;  %v1597_v36 = vmul.f32 0.6931472, %v855_v40  ;;  %v2383_v10 = vld [vmem:[#allocation62_spill] sm:$0xff] }
  0x74   :  { %2358 = vst [vmem:[#allocation51_spill] sm:$0xff] %v1583_v44  ;;  %2360 = vst [vmem:[#allocation66_spill] sm:$0xff] %v1586_v4  ;;  %878 = vrcp.f32 %v2364_v7  ;;  %v1600_v45 = vadd.f32 %v300_v49, %v2368_v58  ;;  %vm394_vm2 = vcmp.ge.f32.partialorder %v2371_v50, 0.0  ;;  %v863_v9 = vpop.eup %862  ;;  %v318_v35 = vsel %vm1509_vm14, %v315_v0, %v312_v51  ;;  %v2380_v0 = vld [vmem:[#allocation18_spill] sm:$0xff]  ;;  %v2385_v53 = vld [vmem:[#allocation20_spill] sm:$0xff] }
  0x75   :  { %2362 = vst [vmem:[#allocation53_spill] sm:$0xff] %v1589_v46  ;;  %2367 = vst [vmem:[#allocation55_spill] sm:$0xff] %v1597_v36  ;;  %880 = vrcp.f32 %v2370_v47  ;;  %vm395_vm3 = vcmp.ge.f32.partialorder %v2373_v37, 0.0  ;;  %vm396_vm4 = vcmp.ge.f32.partialorder %v2374_v5, 0.0  ;;  %v865_v60 = vpop.eup %864  ;;  %v1610_v2 = vadd.f32 %v309_v56, %v2375_v54  ;;  %v2386_v59 = vld [vmem:[#allocation44_spill] sm:$0xff]  ;;  %v2388_v51 = vld [vmem:[#allocation21_spill] sm:$0xff] }
  0x76   :  { %2369 = vst [vmem:[#allocation56_spill] sm:$0xff] %v1600_v45  ;;  %882 = vrcp.f32 %v2372_v39  ;;  %vm397_vm5 = vcmp.ge.f32.partialorder %v2378_v17, 0.0  ;;  %vm398_vm6 = vcmp.ge.f32.partialorder %v2379_v63, 0.0  ;;  %v867_v19 = vpop.eup %866  ;;  %vm399_vm7 = vcmp.ge.f32.partialorder %v2380_v0, 0.0  ;;  %v2389_v29 = vld [vmem:[#allocation46_spill] sm:$0xff]  ;;  %v2390_v6 = vld [vmem:[#allocation24_spill] sm:$0xff] }
  0x77   :  { %2376 = vst [vmem:[#allocation67_spill] sm:$0xff] %v1610_v2  ;;  %884 = vrcp.f32 %v2377_v57  ;;  %vm400_vm8 = vcmp.ge.f32.partialorder %v2381_v1, 0.0  ;;  %v408_v15 = vmul.f32 %v857_v16, %v2382_v34  ;;  %v1624_v13 = vadd.f32 %v318_v35, %v2383_v10  ;;  %v2391_v33 = vld [vmem:[#allocation27_spill] sm:$0xff]  ;;  %v2392_v56 = vld [vmem:[#allocation28_spill] sm:$0xff]  ;;  %v2393_v47 = vld [vmem:[#allocation22_spill] sm:$0xff] }
  0x78   :  { %886 = vrcp.f32 %v1473_v23  ;;  %v869_v41 = vpop.eup %868  ;;  %vm401_vm9 = vcmp.ge.f32.partialorder %v2385_v53, 0.0  ;;  %v409_v42 = vmul.f32 %v859_v32, %v2386_v59  ;;  %v2387_v23 = vld [vmem:[#allocation45_spill] sm:$0xff]  ;;  %vm402_vm10 = vcmp.ge.f32.partialorder %v2388_v51, 0.0  ;;  %v2396_v34 = vld [vmem:[#allocation31_spill] sm:$0xff]  ;;  %v2397_v59 = vld [vmem:[#allocation32_spill] sm:$0xff] }
  0x79   :  { %2384 = vst [vmem:[#allocation68_spill] sm:$0xff] %v1624_v13  ;;  %v410_v40 = vmul.f32 %v861_v3, %v2387_v23  ;;  %v871_v49 = vpop.eup %870  ;;  %v411_v21 = vmul.f32 %v863_v9, %v2389_v29  ;;  %vm403_vm11 = vcmp.ge.f32.partialorder %v2393_v47, 0.0  ;;  %v2394_v35 = vld [vmem:[#allocation49_spill] sm:$0xff]  ;;  %v2398_v13 = vld [vmem:[#allocation23_spill] sm:$0xff]  ;;  %v2399_v29 = vld [vmem:[#allocation52_spill] sm:$0xff]  ;;  %v1643_v38 = vsel %vm392_vm0, %v857_v16, %v408_v15 }
  0x7a   :  { %v873_v58 = vpop.eup %872  ;;  %v412_v39 = vmul.f32 %v865_v60, %v2394_v35  ;;  %v2395_v54 = vld [vmem:[#allocation29_spill] sm:$0xff]  ;;  %vm404_vm12 = vcmp.ge.f32.partialorder %v2398_v13, 0.0  ;;  %v413_v52 = vmul.f32 %v867_v19, %v2399_v29  ;;  %v2401_v36 = vld [vmem:[#allocation34_spill] sm:$0xff]  ;;  %v1652_v45 = vsel %vm393_vm1, %v859_v32, %v409_v42  ;;  %v2407_v50 = vld [vmem:[#allocation59_spill] sm:$0xff] }
  0x7b   :  { %v875_v55 = vpop.eup %874  ;;  %v2400_v7 = vld [vmem:[#allocation33_spill] sm:$0xff]  ;;  %v2403_v57 = vld [vmem:[#allocation26_spill] sm:$0xff]  ;;  %v1656_v61 = vsel %vm394_vm2, %v861_v3, %v410_v40  ;;  %v1660_v16 = vmul.f32 %v1643_v38, %v2390_v6  ;;  %v1670_v32 = vmul.f32 %v1652_v45, %v2391_v33  ;;  %v416_v42 = vmul.f32 %v873_v58, %v2407_v50  ;;  %v2410_v50 = vld [vmem:[#allocation36_spill] sm:$0xff] }
  0x7c   :  { %v2402_v31 = vld [vmem:[#allocation25_spill] sm:$0xff]  ;;  %vm406_vm14 = vcmp.ge.f32.partialorder %v2403_v57, 0.0  ;;  %v2404_v10 = vld [vmem:[#allocation54_spill] sm:$0xff]  ;;  %v1674_v22 = vmul.f32 %v1656_v61, %v2392_v56  ;;  %v1679_v40 = vsel %vm396_vm4, %v865_v60, %v412_v39  ;;  %v429_v44 = vsel %vm397_vm5, %v867_v19, %v413_v52  ;;  %v2411_v39 = vld [vmem:[#allocation63_spill] sm:$0xff] }
  0x7d   :  { %v877_v35 = vpop.eup %876  ;;  %vm405_vm13 = vcmp.ge.f32.partialorder %v2402_v31, 0.0  ;;  %v414_v23 = vmul.f32 %v869_v41, %v2404_v10  ;;  %v2405_v29 = vld [vmem:[#allocation30_spill] sm:$0xff]  ;;  %v1666_v10 = vsel %vm395_vm3, %v863_v9, %v411_v21  ;;  %v2408_v9 = vld [vmem:[#allocation35_spill] sm:$0xff]  ;;  %v2409_v46 = vld [vmem:[#allocation61_spill] sm:$0xff]  ;;  %v1691_v18 = vmul.f32 %v1679_v40, %v2396_v34 }
  0x7e   :  { %v879_v15 = vpop.eup %878  ;;  %vm407_vm0 = vcmp.ge.f32.partialorder %v2405_v29, 0.0  ;;  %v2406_v28 = vld [vmem:[#allocation58_spill] sm:$0xff]  ;;  %v417_v4 = vmul.f32 %v875_v55, %v2409_v46  ;;  %v418_v25 = vmul.f32 %v877_v35, %v2411_v39  ;;  %v1698_v37 = vmul.f32 %v429_v44, %v2397_v59  ;;  %v2412_v62 = vld [vmem:[#allocation37_spill] sm:$0xff]  ;;  %v2416_v0 = vld [vmem:[#allocation40_spill] sm:$0xff] }
  0x7f   :  { %v415_v2 = vmul.f32 %v871_v49, %v2406_v28  ;;  %v881_v3 = vpop.eup %880  ;;  %v1683_v28 = vmul.f32 %v1666_v10, %v2395_v54  ;;  %v430_v30 = vsel %vm398_vm6, %v869_v41, %v414_v23  ;;  %v419_v17 = vmul.f32 %v879_v15, %v1276_v24  ;;  %v2414_v5 = vld [vmem:[#allocation38_spill] sm:$0xff]  ;;  %v2415_v23 = vld [vmem:[#allocation39_spill] sm:$0xff] }
  0x80   :  { %v883_v21 = vpop.eup %882  ;;  %v1705_v52 = vmul.f32 %v430_v30, %v2400_v7  ;;  %v420_v39 = vmul.f32 %v881_v3, %v1282_v20  ;;  %v432_v63 = vsel %vm400_vm8, %v873_v58, %v416_v42  ;;  %v434_v20 = vsel %vm402_vm10, %v877_v35, %v418_v25  ;;  %v2417_v58 = vld [vmem:[#allocation41_spill] sm:$0xff]  ;;  %v2418_v53 = vld [vmem:[#allocation43_spill] sm:$0xff] }
  0x81   :  { %v885_v60 = vpop.eup %884  ;;  %v431_v19 = vsel %vm399_vm7, %v871_v49, %v415_v2  ;;  %v421_v43 = vmul.f32 %v883_v21, %v1297_v11  ;;  %v433_v2 = vsel %vm401_vm9, %v875_v55, %v417_v4  ;;  %v448_v1 = vmul.f32 %v432_v63, %v2408_v9 }
  0x82   :  { %v887_v12 = vpop.eup %886  ;;  %2413 = vst [vmem:[#allocation11_spill] sm:$0xff] %v1705_v52  ;;  %v447_v41 = vmul.f32 %v431_v19, %v2401_v36  ;;  %v422_v24 = vmul.f32 %v885_v60, %v1305_v27  ;;  %v435_v46 = vsel %vm403_vm11, %v879_v15, %v419_v17  ;;  %v449_v11 = vmul.f32 %v433_v2, %v2410_v50 }
  0x83   :  { %v423_v8 = vmul.f32 %v887_v12, %v1359_v26  ;;  %v450_v27 = vmul.f32 %v434_v20, %v2412_v62  ;;  %v436_v55 = vsel %vm404_vm12, %v881_v3, %v420_v39  ;;  %v451_v26 = vmul.f32 %v435_v46, %v2414_v5 }
  0x84   :  { %v472_v25 = vsub.f32 1.0, %v1643_v38  ;;  %v473_v51 = vsub.f32 1.0, %v1652_v45  ;;  %v437_v35 = vsel %vm405_vm13, %v883_v21, %v421_v43  ;;  %v438_v47 = vsel %vm406_vm14, %v885_v60, %v422_v24 }
  0x85   :  { %v452_v15 = vmul.f32 %v436_v55, %v2415_v23  ;;  %v474_v17 = vsub.f32 1.0, %v1656_v61  ;;  %v439_v13 = vsel %vm407_vm0, %v887_v12, %v423_v8  ;;  %v453_v3 = vmul.f32 %v437_v35, %v2416_v0 }
  0x86   :  { %v475_v39 = vsub.f32 1.0, %v1666_v10  ;;  %v476_v38 = vsub.f32 1.0, %v1679_v40  ;;  %v454_v45 = vmul.f32 %v438_v47, %v2417_v58  ;;  %v455_v31 = vmul.f32 %v439_v13, %v2418_v53 }
  0x87   :  { %v477_v43 = vsub.f32 1.0, %v429_v44  ;;  %v478_v57 = vsub.f32 1.0, %v430_v30  ;;  %v479_v21 = vsub.f32 1.0, %v431_v19  ;;  %v480_v60 = vsub.f32 1.0, %v432_v63 }
  0x88   :  { %v481_v24 = vsub.f32 1.0, %v433_v2  ;;  %v482_v4 = vsub.f32 1.0, %v434_v20  ;;  %v483_v61 = vsub.f32 1.0, %v435_v46  ;;  %v484_v42 = vsub.f32 1.0, %v436_v55 }
  0x89   :  { %v485_v29 = vsub.f32 1.0, %v437_v35  ;;  %v486_v8 = vsub.f32 1.0, %v438_v47  ;;  %v487_v12 = vsub.f32 1.0, %v439_v13  ;;  %v2419_v49 = vsub.f32 1.0, %v2390_v6 }
  0x8a   :  { %v2420_v40 = vsub.f32 1.0, %v2391_v33  ;;  %v2421_v14 = vsub.f32 1.0, %v2392_v56  ;;  %v2422_v30 = vsub.f32 1.0, %v2395_v54  ;;  %v2423_v19 = vsub.f32 1.0, %v2396_v34 }
  0x8b   :  { %v488_v10 = vmul.f32 %v472_v25, %v2419_v49  ;;  %v2424_v46 = vsub.f32 1.0, %v2397_v59  ;;  %v2425_v20 = vsub.f32 1.0, %v2400_v7  ;;  %v2426_v49 = vsub.f32 1.0, %v2401_v36 }
  0x8c   :  { %v489_v48 = vmul.f32 %v473_v51, %v2420_v40  ;;  %v490_v52 = vmul.f32 %v474_v17, %v2421_v14  ;;  %v491_v44 = vmul.f32 %v475_v39, %v2422_v30  ;;  %v492_v63 = vmul.f32 %v476_v38, %v2423_v19 }
  0x8d   :  { %v493_v2 = vmul.f32 %v477_v43, %v2424_v46  ;;  %v494_v55 = vmul.f32 %v478_v57, %v2425_v20  ;;  %v495_v25 = vmul.f32 %v479_v21, %v2426_v49  ;;  %v2427_v51 = vsub.f32 1.0, %v2408_v9 }
  0x8e   :  { %v2428_v14 = vsub.f32 1.0, %v2410_v50  ;;  %v2429_v17 = vsub.f32 1.0, %v2412_v62  ;;  %v2430_v39 = vsub.f32 1.0, %v2414_v5  ;;  %v2431_v43 = vsub.f32 1.0, %v2415_v23 }
  0x8f   :  { %v496_v35 = vmul.f32 %v480_v60, %v2427_v51  ;;  %v2432_v57 = vsub.f32 1.0, %v2416_v0  ;;  %v2433_v21 = vsub.f32 1.0, %v2417_v58  ;;  %v2434_v60 = vsub.f32 1.0, %v2418_v53  ;;  %v2435_v51 = vld [vmem:[#allocation11_spill] sm:$0xff] }
  0x90   :  { %v497_v47 = vmul.f32 %v481_v24, %v2428_v14  ;;  %v498_v13 = vmul.f32 %v482_v4, %v2429_v17  ;;  %v499_v38 = vmul.f32 %v483_v61, %v2430_v39  ;;  %v500_v40 = vmul.f32 %v484_v42, %v2431_v43 }
  0x91   :  { %v501_v30 = vmul.f32 %v485_v29, %v2432_v57  ;;  %v502_v19 = vmul.f32 %v486_v8, %v2433_v21  ;;  %v503_v46 = vmul.f32 %v487_v12, %v2434_v60  ;;  %v504_v24 = vadd.f32 %v488_v10, %v1660_v16 }
  0x92   :  { %v505_v20 = vadd.f32 %v489_v48, %v1670_v32  ;;  %v506_v4 = vadd.f32 %v490_v52, %v1674_v22  ;;  %v507_v61 = vadd.f32 %v491_v44, %v1683_v28  ;;  %v508_v49 = vadd.f32 %v492_v63, %v1691_v18 }
  0x93   :  { %v509_v42 = vadd.f32 %v493_v2, %v1698_v37  ;;  %v510_v29 = vadd.f32 %v494_v55, %v2435_v51  ;;  %v1785_v14 = vadd.f32 %v495_v25, %v447_v41  ;;  %v1787_v8 = vadd.f32 %v496_v35, %v448_v1 }
  0x94   :  { %v1789_v17 = vadd.f32 %v497_v47, %v449_v11  ;;  %v1791_v12 = vadd.f32 %v498_v13, %v450_v27  ;;  %v1793_v16 = vadd.f32 %v499_v38, %v451_v26  ;;  %v1795_v48 = vadd.f32 %v500_v40, %v452_v15 }
  0x95   :  { %v1797_v32 = vadd.f32 %v501_v30, %v453_v3  ;;  %v1799_v22 = vadd.f32 %v502_v19, %v454_v45  ;;  %v1801_v18 = vadd.f32 %v503_v46, %v455_v31  ;;  %v520_v28 = vmul.f32 0.25, %v2390_v6 }
  0x96   :  { %v521_v37 = vmul.f32 0.25, %v2391_v33  ;;  %v522_v52 = vmul.f32 0.25, %v2392_v56  ;;  %v523_v41 = vmul.f32 0.25, %v2395_v54  ;;  %v524_v1 = vmul.f32 0.25, %v2396_v34 }
  0x97   :  { %v525_v11 = vmul.f32 0.25, %v2397_v59  ;;  %v526_v27 = vmul.f32 0.25, %v2400_v7  ;;  %v527_v26 = vmul.f32 0.25, %v2401_v36  ;;  %v528_v15 = vmul.f32 0.25, %v2408_v9 }
  0x98   :  { %v529_v3 = vmul.f32 0.25, %v2410_v50  ;;  %v1813_v45 = vsub.f32 1.0, %v504_v24  ;;  %v530_v31 = vmul.f32 0.25, %v2412_v62  ;;  %v531_v10 = vmul.f32 0.25, %v2414_v5 }
  0x99   :  { %v532_v44 = vmul.f32 0.25, %v2415_v23  ;;  %v1818_v63 = vsub.f32 1.0, %v505_v20  ;;  %v533_v2 = vmul.f32 0.25, %v2416_v0  ;;  %v534_v55 = vmul.f32 0.25, %v2417_v58 }
  0x9a   :  { %v1823_v25 = vmul.f32 0.25, %v2418_v53  ;;  %v2436_v35 = vsub.f32 1.0, %v2390_v6  ;;  %v2437_v13 = vsub.f32 1.0, %v2391_v33  ;;  %v2438_v38 = vsub.f32 1.0, %v2392_v56 }
  0x9b   :  { %v2439_v40 = vsub.f32 1.0, %v2395_v54  ;;  %v1833_v30 = vsub.f32 1.0, %v506_v4  ;;  %v2440_v21 = vsub.f32 1.0, %v2396_v34  ;;  %v2441_v60 = vsub.f32 1.0, %v2397_v59 }
  0x9c   :  { %v536_v47 = vmul.f32 0.75, %v2436_v35  ;;  %v537_v39 = vmul.f32 0.75, %v2437_v13  ;;  %v538_v43 = vmul.f32 0.75, %v2438_v38  ;;  %v1839_v24 = vsub.f32 1.0, %v507_v61 }
  0x9d   :  { %v539_v57 = vmul.f32 0.75, %v2439_v40  ;;  %v540_v19 = vmul.f32 0.75, %v2440_v21  ;;  %v541_v46 = vmul.f32 0.75, %v2441_v60  ;;  %888 = vrsqrt.f32 %v1813_v45 }
  0x9e   :  { %v2442_v6 = vsub.f32 1.0, %v2400_v7  ;;  %v2443_v56 = vsub.f32 1.0, %v2401_v36  ;;  %v1846_v54 = vsub.f32 1.0, %v508_v49  ;;  %890 = vrsqrt.f32 %v1818_v63 }
  0x9f   :  { %v2444_v34 = vsub.f32 1.0, %v2408_v9  ;;  %v2445_v59 = vsub.f32 1.0, %v2410_v50  ;;  %v2446_v61 = vsub.f32 1.0, %v2412_v62  ;;  %v2447_v13 = vsub.f32 1.0, %v2414_v5 }
  0xa0   :  { %v542_v33 = vmul.f32 0.75, %v2442_v6  ;;  %v543_v20 = vmul.f32 0.75, %v2443_v56  ;;  %v2448_v38 = vsub.f32 1.0, %v2415_v23  ;;  %v2449_v49 = vsub.f32 1.0, %v2416_v0 }
  0xa1   :  { %v544_v4 = vmul.f32 0.75, %v2444_v34  ;;  %v545_v51 = vmul.f32 0.75, %v2445_v59  ;;  %v546_v35 = vmul.f32 0.75, %v2446_v61  ;;  %v547_v7 = vmul.f32 0.75, %v2447_v13 }
  0xa2   :  { %v548_v36 = vmul.f32 0.75, %v2448_v38  ;;  %v549_v40 = vmul.f32 0.75, %v2449_v49  ;;  %v2450_v21 = vsub.f32 1.0, %v2417_v58  ;;  %892 = vrsqrt.f32 %v1833_v30 }
  0xa3   :  { %v2451_v9 = vsub.f32 1.0, %v2418_v53  ;;  %v1868_v62 = vadd.f32 %v536_v47, %v520_v28  ;;  %v1870_v6 = vadd.f32 %v537_v39, %v521_v37  ;;  %894 = vrsqrt.f32 %v1839_v24 }
  0xa4   :  { %v550_v60 = vmul.f32 0.75, %v2450_v21  ;;  %v1873_v5 = vadd.f32 %v538_v43, %v522_v52  ;;  %v1875_v23 = vadd.f32 %v539_v57, %v523_v41  ;;  %v1877_v0 = vsub.f32 1.0, %v509_v42 }
  0xa5   :  { %v1866_v50 = vmul.f32 0.75, %v2451_v9  ;;  %896 = vrsqrt.f32 %v1846_v54  ;;  %v1880_v58 = vadd.f32 %v540_v19, %v524_v1  ;;  %v1882_v56 = vadd.f32 %v541_v46, %v525_v11 }
  0xa6   :  { %v1884_v53 = vadd.f32 %v542_v33, %v526_v27  ;;  %v1886_v28 = vsub.f32 1.0, %v510_v29  ;;  %v1888_v37 = vadd.f32 %v543_v20, %v527_v26  ;;  %v1890_v47 = vadd.f32 %v544_v4, %v528_v15 }
  0xa7   :  { %v1892_v52 = vadd.f32 %v545_v51, %v529_v3  ;;  %v1894_v41 = vadd.f32 %v546_v35, %v530_v31  ;;  %v1896_v42 = vadd.f32 %v547_v7, %v531_v10  ;;  %v1898_v39 = vadd.f32 %v548_v36, %v532_v44  ;;  %v889_v15 = vpop.eup %888 }
  0xa8   :  { %v1900_v1 = vadd.f32 %v549_v40, %v533_v2  ;;  %v1903_v11 = vsub.f32 1.0, %v1785_v14  ;;  %v1905_v27 = vadd.f32 %v550_v60, %v534_v55  ;;  %v1908_v29 = vsub.f32 1.0, %v1787_v8  ;;  %v891_v10 = vpop.eup %890 }
  0xa9   :  { %v1911_v26 = vsub.f32 1.0, %v1789_v17  ;;  %898 = vrsqrt.f32 %v1877_v0  ;;  %v1915_v3 = vsub.f32 1.0, %v1791_v12  ;;  %v1918_v31 = vsub.f32 1.0, %v1793_v16 }
  0xaa   :  { %v1921_v14 = vsub.f32 1.0, %v1795_v48  ;;  %900 = vrsqrt.f32 %v1886_v28  ;;  %v1925_v8 = vsub.f32 1.0, %v1797_v32  ;;  %v1928_v17 = vsub.f32 1.0, %v1799_v22 }
  0xab   :  { %v1931_v44 = vsub.f32 1.0, %v1801_v18  ;;  %vm586_vm1 = vcmp.eq.f32.partialorder %v1813_v45, inf  ;;  %vm588_vm2 = vcmp.eq.f32.partialorder %v1813_v45, 0.0  ;;  %v589_v12 = vand.u32 2147483648, %v1813_v45 }
  0xac   :  { %vm593_vm3 = vcmp.eq.f32.partialorder %v1818_v63, inf  ;;  %902 = vrsqrt.f32 %v1903_v11  ;;  %v893_v16 = vpop.eup %892  ;;  %vm595_vm4 = vcmp.eq.f32.partialorder %v1818_v63, 0.0  ;;  %v596_v48 = vand.u32 2147483648, %v1818_v63 }
  0xad   :  { %vm600_vm5 = vcmp.eq.f32.partialorder %v1833_v30, inf  ;;  %904 = vrsqrt.f32 %v1908_v29  ;;  %v895_v32 = vpop.eup %894  ;;  %v585_v22 = vmul.f32 %v889_v15, %v1813_v45  ;;  %v592_v18 = vmul.f32 %v891_v10, %v1818_v63 }
  0xae   :  { %vm602_vm6 = vcmp.eq.f32.partialorder %v1833_v30, 0.0  ;;  %906 = vrsqrt.f32 %v1911_v26  ;;  %v603_v55 = vand.u32 2147483648, %v1833_v30  ;;  %vm607_vm7 = vcmp.eq.f32.partialorder %v1839_v24, inf }
  0xaf   :  { %v897_v2 = vpop.eup %896  ;;  %vm609_vm8 = vcmp.eq.f32.partialorder %v1839_v24, 0.0  ;;  %v610_v43 = vand.u32 2147483648, %v1839_v24  ;;  %v599_v57 = vmul.f32 %v893_v16, %v1833_v30  ;;  %vm614_vm9 = vcmp.eq.f32.partialorder %v1846_v54, inf }
  0xb0   :  { %vm616_vm10 = vcmp.eq.f32.partialorder %v1846_v54, 0.0  ;;  %908 = vrsqrt.f32 %v1915_v3  ;;  %v617_v19 = vand.u32 2147483648, %v1846_v54  ;;  %vm621_vm11 = vcmp.eq.f32.partialorder %v1877_v0, inf }
  0xb1   :  { %v624_v46 = vand.u32 2147483648, %v1877_v0  ;;  %910 = vrsqrt.f32 %v1918_v31  ;;  %v587_v33 = vsel %vm586_vm1, %v1813_v45, %v585_v22  ;;  %v594_v20 = vsel %vm593_vm3, %v1818_v63, %v592_v18  ;;  %v2452_v18 = vld [vmem:[#allocation72_spill] sm:$0xff] }
  0xb2   :  { %v606_v34 = vmul.f32 %v895_v32, %v1839_v24  ;;  %v613_v4 = vmul.f32 %v897_v2, %v1846_v54  ;;  %vm623_vm12 = vcmp.eq.f32.partialorder %v1877_v0, 0.0  ;;  %vm628_vm13 = vcmp.eq.f32.partialorder %v1886_v28, inf }
  0xb3   :  { %v899_v59 = vpop.eup %898  ;;  %v631_v51 = vand.u32 2147483648, %v1886_v28  ;;  %vm635_vm14 = vcmp.eq.f32.partialorder %v1903_v11, inf  ;;  %v638_v61 = vand.u32 2147483648, %v1903_v11  ;;  %v601_v13 = vsel %vm600_vm5, %v1833_v30, %v599_v57  ;;  %v2453_v57 = vld [vmem:[#allocation74_spill] sm:$0xff] }
  0xb4   :  { %v901_v35 = vpop.eup %900  ;;  %vm630_vm0 = vcmp.eq.f32.partialorder %v1886_v28, 0.0  ;;  %vm642_vm1 = vcmp.eq.f32.partialorder %v1908_v29, inf  ;;  %v645_v7 = vand.u32 2147483648, %v1908_v29  ;;  %912 = vrsqrt.f32 %v1921_v14 }
  0xb5   :  { %v590_v38 = vsel %vm588_vm2, %v589_v12, %v587_v33  ;;  %v597_v36 = vsel %vm595_vm4, %v596_v48, %v594_v20  ;;  %vm649_vm3 = vcmp.eq.f32.partialorder %v1911_v26, inf  ;;  %v652_v49 = vand.u32 2147483648, %v1911_v26 }
  0xb6   :  { %v903_v40 = vpop.eup %902  ;;  %v608_v21 = vsel %vm607_vm7, %v1839_v24, %v606_v34  ;;  %v615_v60 = vsel %vm614_vm9, %v1846_v54, %v613_v4  ;;  %v620_v9 = vmul.f32 %v899_v59, %v1877_v0  ;;  %vm637_vm2 = vcmp.eq.f32.partialorder %v1903_v11, 0.0 }
  0xb7   :  { %vm656_vm5 = vcmp.eq.f32.partialorder %v1915_v3, inf  ;;  %v905_v15 = vpop.eup %904  ;;  %v604_v10 = vsel %vm602_vm6, %v603_v55, %v601_v13  ;;  %v627_v12 = vmul.f32 %v901_v35, %v1886_v28  ;;  %v659_v16 = vand.u32 2147483648, %v1915_v3 }
  0xb8   :  { %914 = vrsqrt.f32 %v1925_v8  ;;  %v907_v48 = vpop.eup %906  ;;  %vm644_vm4 = vcmp.eq.f32.partialorder %v1908_v29, 0.0  ;;  %vm651_vm7 = vcmp.eq.f32.partialorder %v1911_v26, 0.0  ;;  %v696_v32 = vmul.f32 %v590_v38, %v1813_v45 }
  0xb9   :  { %v697_v22 = vmul.f32 %v597_v36, %v1818_v63  ;;  %v712_v2 = vmul.f32 %v1868_v62, %v2452_v18  ;;  %v713_v55 = vmul.f32 %v1870_v6, %v2453_v57  ;;  %v611_v33 = vsel %vm609_vm8, %v610_v43, %v608_v21  ;;  %v2454_v6 = vld [vmem:[#allocation76_spill] sm:$0xff]  ;;  %v2455_v36 = vld [vmem:[#allocation77_spill] sm:$0xff] }
  0xba   :  { %v618_v20 = vsel %vm616_vm10, %v617_v19, %v615_v60  ;;  %vm663_vm6 = vcmp.eq.f32.partialorder %v1918_v31, inf  ;;  %v666_v34 = vand.u32 2147483648, %v1918_v31  ;;  %v909_v4 = vpop.eup %908  ;;  %v622_v45 = vsel %vm621_vm11, %v1877_v0, %v620_v9 }
  0xbb   :  { %v634_v63 = vmul.f32 %v903_v40, %v1903_v11  ;;  %vm658_vm9 = vcmp.eq.f32.partialorder %v1915_v3, 0.0  ;;  %v698_v62 = vmul.f32 %v604_v10, %v1833_v30  ;;  %v714_v43 = vmul.f32 %v1873_v5, %v2454_v6  ;;  %v911_v59 = vpop.eup %910  ;;  %v2456_v10 = vld [vmem:[#allocation78_spill] sm:$0xff] }
  0xbc   :  { %v629_v19 = vsel %vm628_vm13, %v1886_v28, %v627_v12  ;;  %v641_v35 = vmul.f32 %v905_v15, %v1908_v29  ;;  %v648_v13 = vmul.f32 %v907_v48, %v1911_v26  ;;  %916 = vrsqrt.f32 %v1928_v17 }
  0xbd   :  { %vm665_vm8 = vcmp.eq.f32.partialorder %v1918_v31, 0.0  ;;  %v699_v38 = vmul.f32 %v611_v33, %v1839_v24  ;;  %v715_v30 = vmul.f32 %v1875_v23, %v2455_v36  ;;  %v728_v40 = vmul.f32 %v712_v2, %v696_v32  ;;  %v2460_v36 = vld [vmem:[#allocation65_spill] sm:$0xff] }
  0xbe   :  { %v729_v5 = vmul.f32 %v713_v55, %v697_v22  ;;  %v625_v21 = vsel %vm623_vm12, %v624_v46, %v622_v45  ;;  %v655_v60 = vmul.f32 %v909_v4, %v1915_v3  ;;  %vm670_vm10 = vcmp.eq.f32.partialorder %v1921_v14, inf  ;;  %v913_v9 = vpop.eup %912  ;;  %v2458_v4 = vld [vmem:[#allocation48_spill] sm:$0xff] }
  0xbf   :  { %918 = vrsqrt.f32 %v1931_v44  ;;  %v636_v15 = vsel %vm635_vm14, %v1903_v11, %v634_v63  ;;  %v700_v24 = vmul.f32 %v618_v20, %v1846_v54  ;;  %v716_v23 = vmul.f32 %v1880_v58, %v2456_v10  ;;  %v2457_v54 = vld [vmem:[#allocation47_spill] sm:$0xff] }
  0xc0   :  { %v730_v12 = vmul.f32 %v714_v43, %v698_v62  ;;  %v632_v46 = vsel %vm630_vm0, %v631_v51, %v629_v19  ;;  %v643_v48 = vsel %vm642_vm1, %v1908_v29, %v641_v35  ;;  %v650_v32 = vsel %vm649_vm3, %v1911_v26, %v648_v13  ;;  %v2459_v43 = vld [vmem:[#allocation50_spill] sm:$0xff] }
  0xc1   :  { %v662_v22 = vmul.f32 %v911_v59, %v1918_v31  ;;  %v701_v18 = vmul.f32 %v625_v21, %v1877_v0  ;;  %v717_v2 = vmul.f32 %v1882_v56, %v2457_v54  ;;  %v731_v58 = vmul.f32 %v715_v30, %v699_v38  ;;  %v2463_v54 = vld [vmem:[#allocation53_spill] sm:$0xff] }
  0xc2   :  { %v744_v57 = vadd.f32 %v729_v5, %v728_v40  ;;  %v915_v55 = vpop.eup %914  ;;  %v639_v51 = vsel %vm637_vm2, %v638_v61, %v636_v15  ;;  %v657_v33 = vsel %vm656_vm5, %v1915_v3, %v655_v60  ;;  %v669_v20 = vmul.f32 %v913_v9, %v1921_v14  ;;  %v2461_v15 = vld [vmem:[#allocation51_spill] sm:$0xff] }
  0xc3   :  { %vm672_vm11 = vcmp.eq.f32.partialorder %v1921_v14, 0.0  ;;  %v702_v0 = vmul.f32 %v632_v46, %v1886_v28  ;;  %v718_v56 = vmul.f32 %v1884_v53, %v2458_v4  ;;  %v732_v45 = vmul.f32 %v716_v23, %v700_v24  ;;  %v2462_v46 = vld [vmem:[#allocation66_spill] sm:$0xff]  ;;  %v2465_v4 = vld [vmem:[#allocation64_spill] sm:$0xff] }
  0xc4   :  { %v745_v63 = vadd.f32 %v744_v57, %v730_v12  ;;  %v646_v61 = vsel %vm644_vm4, %v645_v7, %v643_v48  ;;  %v653_v62 = vsel %vm651_vm7, %v652_v49, %v650_v32  ;;  %v664_v6 = vsel %vm663_vm6, %v1918_v31, %v662_v22 }
  0xc5   :  { %v673_v28 = vand.u32 2147483648, %v1921_v14  ;;  %v703_v53 = vmul.f32 %v639_v51, %v1903_v11  ;;  %v719_v59 = vmul.f32 %v1888_v37, %v2459_v43  ;;  %v733_v19 = vmul.f32 %v717_v2, %v701_v18 }
  0xc6   :  { %v746_v35 = vadd.f32 %v745_v63, %v731_v58  ;;  %v917_v13 = vpop.eup %916  ;;  %v660_v7 = vsel %vm658_vm9, %v659_v16, %v657_v33  ;;  %v671_v49 = vsel %vm670_vm10, %v1921_v14, %v669_v20  ;;  %v676_v38 = vmul.f32 %v915_v55, %v1925_v8  ;;  %v2464_v33 = vld [vmem:[#allocation56_spill] sm:$0xff] }
  0xc7   :  { %vm677_vm12 = vcmp.eq.f32.partialorder %v1925_v8, inf  ;;  %v704_v11 = vmul.f32 %v646_v61, %v1908_v29  ;;  %v720_v37 = vmul.f32 %v1890_v47, %v2460_v36  ;;  %v734_v30 = vmul.f32 %v718_v56, %v702_v0  ;;  %v2467_v56 = vld [vmem:[#allocation75_spill] sm:$0xff] }
  0xc8   :  { %v747_v40 = vadd.f32 %v746_v35, %v732_v45  ;;  %v667_v21 = vsel %vm665_vm8, %v666_v34, %v664_v6  ;;  %vm679_vm13 = vcmp.eq.f32.partialorder %v1925_v8, 0.0  ;;  %v680_v16 = vand.u32 2147483648, %v1925_v8  ;;  %v2468_v45 = vld [vmem:[#allocation55_spill] sm:$0xff]  ;;  %v2471_v35 = vld [vmem:[#allocation68_spill] sm:$0xff] }
  0xc9   :  { %v919_v5 = vpop.eup %918  ;;  %v705_v60 = vmul.f32 %v653_v62, %v1911_v26  ;;  %v683_v9 = vmul.f32 %v917_v13, %v1928_v17  ;;  %v721_v29 = vmul.f32 %v1892_v52, %v2461_v15  ;;  %v735_v24 = vmul.f32 %v719_v59, %v703_v53 }
  0xca   :  { %v748_v10 = vadd.f32 %v747_v40, %v733_v19  ;;  %v674_v47 = vsel %vm672_vm11, %v673_v28, %v671_v49  ;;  %v678_v23 = vsel %vm677_vm12, %v1925_v8, %v676_v38  ;;  %vm684_vm14 = vcmp.eq.f32.partialorder %v1928_v17, inf  ;;  %v2470_v28 = vld [vmem:[#allocation67_spill] sm:$0xff] }
  0xcb   :  { %v706_v34 = vmul.f32 %v660_v7, %v1915_v3  ;;  %v690_v12 = vmul.f32 %v919_v5, %v1931_v44  ;;  %v722_v26 = vmul.f32 %v1894_v41, %v2462_v46  ;;  %v736_v48 = vmul.f32 %v720_v37, %v704_v11 }
  0xcc   :  { %v749_v32 = vadd.f32 %v748_v10, %v734_v30  ;;  %vm686_vm0 = vcmp.eq.f32.partialorder %v1928_v17, 0.0  ;;  %v687_v52 = vand.u32 2147483648, %v1928_v17  ;;  %vm691_vm1 = vcmp.eq.f32.partialorder %v1931_v44, inf }
  0xcd   :  { %v707_v22 = vmul.f32 %v667_v21, %v1918_v31  ;;  %v685_v18 = vsel %vm684_vm14, %v1928_v17, %v683_v9  ;;  %v723_v3 = vmul.f32 %v1896_v42, %v2463_v54  ;;  %v737_v2 = vmul.f32 %v721_v29, %v705_v60 }
  0xce   :  { %v750_v58 = vadd.f32 %v749_v32, %v735_v24  ;;  %v681_v41 = vsel %vm679_vm13, %v680_v16, %v678_v23  ;;  %vm693_vm3 = vcmp.eq.f32.partialorder %v1931_v44, 0.0  ;;  %v694_v57 = vand.u32 2147483648, %v1931_v44 }
  0xcf   :  { %v708_v55 = vmul.f32 %v674_v47, %v1921_v14  ;;  %v692_v51 = vsel %vm691_vm1, %v1931_v44, %v690_v12  ;;  %v724_v31 = vmul.f32 %v1898_v39, %v2464_v33  ;;  %v738_v20 = vmul.f32 %v722_v26, %v706_v34 }
  0xd0   :  { %v751_v0 = vadd.f32 %v750_v58, %v736_v48  ;;  %v2469_v63 = vsel %vm1522_vm15, %v2467_v56, %v2468_v45  ;;  %v567_v62 = vadd.f32 %v1866_v50, %v1823_v25  ;;  %v688_v14 = vsel %vm686_vm0, %v687_v52, %v685_v18 }
  0xd1   :  { %v343_v61 = vadd.f32 %v2469_v63, %v2465_v4  ;;  %v709_v6 = vmul.f32 %v681_v41, %v1925_v8  ;;  %v725_v39 = vmul.f32 %v1900_v1, %v2470_v28  ;;  %v739_v53 = vmul.f32 %v723_v3, %v707_v22 }
  0xd2   :  { %v752_v43 = vadd.f32 %v751_v0, %v737_v2  ;;  %v695_v59 = vsel %vm693_vm3, %v694_v57, %v692_v51  ;;  %v710_v19 = vmul.f32 %v688_v14, %v1928_v17  ;;  %v726_v13 = vmul.f32 %v1905_v27, %v2471_v35 }
  0xd3   :  { %v740_v7 = vmul.f32 %v724_v31, %v708_v55  ;;  %v711_v25 = vmul.f32 %v695_v59, %v1931_v44  ;;  %v727_v50 = vmul.f32 %v567_v62, %v343_v61  ;;  %v741_v38 = vmul.f32 %v725_v39, %v709_v6 }
  0xd4   :  { %v753_v49 = vadd.f32 %v752_v43, %v738_v20  ;;  %v742_v36 = vmul.f32 %v726_v13, %v710_v19 }
  0xd5   :  { %v743_v37 = vmul.f32 %v727_v50, %v711_v25 }
  0xd6   :  { %v754_v11 = vadd.f32 %v753_v49, %v739_v53 }
  0xd8   :  { %v755_v8 = vadd.f32 %v754_v11, %v740_v7 }
  0xda   :  { %v756_v30 = vadd.f32 %v755_v8, %v741_v38 }
  0xdc   :  { %v757_v1 = vadd.f32 %v756_v30, %v742_v36 }
  0xde   :  { %v758_v40 = vadd.f32 %v757_v1, %v743_v37 }
  0xe0   :  { %759 = vadd.xlane.f32.xlu0 %v758_v40 }
 0x16d   :  { %v760_v5 = vpop.xlane.xlu0 %759 }
 0x16e   :  { %v761_v21 = vrot.slane %v760_v5, 4 }
 0x170   :  { %v762_v17 = vadd.f32 %v761_v21, %v760_v5 }
 0x172   :  { %v763_v16 = vrot.slane %v762_v17, 2 }
 0x174   :  { %v764_v60 = vadd.f32 %v763_v16, %v762_v17 }
 0x176   :  { %v765_v27 = vrot.slane %v764_v60, 1 }
 0x178   :  { %v766_v9 = vadd.f32 %v765_v27, %v764_v60 }
 0x17a   :  { %785 = vpush %v766_v9 }
 0x1ab   :  { %s786_s1 = spop %785 }
 0x1ac   :  { %769 = sst [smem:[#allocation7]] %s786_s1 }
 0x1ad   :  { %973 = shalt.err (!%p970_p4)
}
 0x1ae   :  { %s984_s13 = smov [#allocation7]  }
 0x1af   :  { %777 = dma.smem_to_hbm %s984_s13, 16, %s2154_s2, [#allocation4]  }
 0x1b0   :  { %978 = dma.done.wait [#allocation4], 16  }
 0x1b1   :  { %979 = vsyncadd [#allocation4], 4294967280 }
 0x1b2   :  { %781 = sfence }
 0x1b3   :  { %782 = vsyncpa [#allocation3], 1 }
 0x1b4   :  { %783 = vsyncpa [#allocation6], 1 }
 0x1b5   :  { %784 = vsyncpa [#allocation4], 1 }

</bundles_post_ra>
